<compile_context>
chip_gen: v6e
topology: v6e:2x2x1
jax: 0.10.0
libtpu: 0.0.40
codegen_flags: <defaults>
</compile_context>

<pallas_src>
import jax
import jax.numpy as jnp
import numpy as np
from jax.experimental import pallas as pl
from jax.experimental.pallas import tpu as pltpu

HIDDEN = 256   # fixed by the module (fc1 / fc2 are 256 wide)
LANE = 128


def _round_up(n, m):
    return ((n + m - 1) // m) * m


def _choose_tiling(B, cap=2048, min_steps=2):
    """Return (tb, B_pad) with B_pad % tb == 0 and tb % 8 == 0 or tb == B_pad.

    min_steps=2 lets the 'parallel' batch axis shard across v7x's two
    TensorCores when the batch splits cleanly (no effect on v5e/v6e).
    """
    if B <= 8:
        return B, B                                  # single full-extent step
    if B <= cap:
        if min_steps > 1 and B % (8 * min_steps) == 0:
            return B // min_steps, B                 # >= 2 steps, tiles % 8 == 0
        return B, B                                  # single full-extent step
    # Large batch: tile at <= cap (multiple of 8); pad ragged batches.
    tb = (cap // 8) * 8
    n_steps = -(-B // tb)
    return tb, n_steps * tb


def acnet_kernel(x_ref, w1_ref, b1_ref, w2_ref, b2_ref, wh_ref, bh_ref, out_ref):
    # fc1 + ReLU   (bf16 matmul operands, f32 accumulation / bias / ReLU)
    x = x_ref[...].astype(jnp.bfloat16)              # in-kernel cast (VPU)
    h = jnp.dot(x, w1_ref[...], preferred_element_type=jnp.float32)
    h = jnp.maximum(h + b1_ref[...], 0.0).astype(jnp.bfloat16)
    # fc2 + ReLU
    h = jnp.dot(h, w2_ref[...], preferred_element_type=jnp.float32)
    h = jnp.maximum(h + b2_ref[...], 0.0).astype(jnp.bfloat16)
    # fused (policy || value) head: lane-dense 128-padded output
    out = jnp.dot(h, wh_ref[...], preferred_element_type=jnp.float32) + bh_ref[...]
    out_ref[...] = out.astype(out_ref.dtype)


def prepare_params(params):
    """One-time packing of the module parameters (call once, reuse forever)."""
    w1, b1, w2, b2, wp, bp, wv, bv = params
    action_size = wp.shape[1]
    head_pad = _round_up(action_size + 1, LANE)      # e.g. 41 -> 128
    wh = jnp.pad(jnp.concatenate([wp, wv], axis=1),
                 ((0, 0), (0, head_pad - (action_size + 1))))
    bh = jnp.pad(jnp.concatenate([bp, bv], axis=1),
                 ((0, 0), (0, head_pad - (action_size + 1))))
    packed = (w1.astype(jnp.bfloat16), b1.astype(jnp.float32),
              w2.astype(jnp.bfloat16), b2.astype(jnp.float32),
              wh.astype(jnp.bfloat16), bh.astype(jnp.float32))
    return packed, action_size


def acnetwork_forward(x, packed, action_size, *, batch_tile=None,
                      out_dtype=jnp.bfloat16):
    """Fused ACNetwork forward. Returns (logits, v_values) in `out_dtype`.

    Jit this together with its consumer so the output slices fuse.
    """
    B, input_size = x.shape
    w1b, b1f, w2b, b2f, whb, bhf = packed
    assert w1b.shape[0] == input_size and w1b.shape[1] == HIDDEN
    head_pad = whb.shape[1]

    if batch_tile is None:
        tb, B_pad = _choose_tiling(B)
    else:
        tb = batch_tile
        B_pad = _round_up(B, tb)
        assert tb % 8 == 0 or tb == B_pad, "batch_tile must be a multiple of 8"

    if B_pad != B:  # ragged large batch only; small batches never pad
        x = jnp.pad(x, ((0, B_pad - B), (0, 0)))

    const = lambda shape: pl.BlockSpec(shape, lambda i: (0, 0))

    out = pl.pallas_call(
        acnet_kernel,
        out_shape=jax.ShapeDtypeStruct((B_pad, head_pad), out_dtype),
        grid_spec=pltpu.PrefetchScalarGridSpec(
            num_scalar_prefetch=0,
            grid=(B_pad // tb,),
            in_specs=[
                pl.BlockSpec((tb, input_size), lambda i: (i, 0)),  # x (batch tiled, unpadded K)
                const((input_size, HIDDEN)),                       # w1 (VMEM resident)
                const((1, HIDDEN)),                                # b1
                const((HIDDEN, HIDDEN)),                           # w2
                const((1, HIDDEN)),                                # b2
                const((HIDDEN, head_pad)),                         # [wp || wv] padded
                const((1, head_pad)),                              # [bp || bv] padded
            ],
            out_specs=pl.BlockSpec((tb, head_pad), lambda i: (i, 0)),
        ),
        compiler_params=pltpu.CompilerParams(
            dimension_semantics=("parallel",)),
    )(x, w1b, b1f, w2b, b2f, whb, bhf)

    logits = out[:B, :action_size]
    v = out[:B, action_size:action_size + 1]
    return logits, v


def init_params(key, input_size, action_size):
    """PyTorch-style init: U(-1/sqrt(fan_in), 1/sqrt(fan_in)).

    Weights are stored as (in_features, out_features) == W_pt.T, so
    y = x @ W + b matches F.linear(x, W_pt, b).
    """
    def linear(k, fan_in, fan_out):
        kw, kb = jax.random.split(k)
        bound = 1.0 / np.sqrt(fan_in)
        w = jax.random.uniform(kw, (fan_in, fan_out), jnp.float32, -bound, bound)
        b = jax.random.uniform(kb, (1, fan_out), jnp.float32, -bound, bound)
        return w, b

    k1, k2, k3, k4 = jax.random.split(key, 4)
    w1, b1 = linear(k1, input_size, HIDDEN)
    w2, b2 = linear(k2, HIDDEN, HIDDEN)
    wp, bp = linear(k3, HIDDEN, action_size)
    wv, bv = linear(k4, HIDDEN, 1)
    return (w1, b1, w2, b2, wp, bp, wv, bv)


def reference_forward_f32(x, params):
    w1, b1, w2, b2, wp, bp, wv, bv = params
    h = jnp.maximum(x @ w1 + b1, 0.0)
    h = jnp.maximum(h @ w2 + b2, 0.0)
    return h @ wp + bp, h @ wv + bv


def reference_forward_bf16(x, params):
    """Mirrors the kernel's bf16 operands / f32 accumulation exactly."""
    w1, b1, w2, b2, wp, bp, wv, bv = params
    h = jnp.dot(x.astype(jnp.bfloat16), w1.astype(jnp.bfloat16),
                preferred_element_type=jnp.float32) + b1
    h = jnp.maximum(h, 0.0).astype(jnp.bfloat16)
    h = jnp.dot(h, w2.astype(jnp.bfloat16),
                preferred_element_type=jnp.float32) + b2
    h = jnp.maximum(h, 0.0).astype(jnp.bfloat16)
    logits = jnp.dot(h, wp.astype(jnp.bfloat16),
                     preferred_element_type=jnp.float32) + bp
    v = jnp.dot(h, wv.astype(jnp.bfloat16),
                preferred_element_type=jnp.float32) + bv
    return logits, v


if __name__ == "__main__":
    # Tetris-like sizes, kept small: 20x10 board -> input_size=200, 40 actions.
    batch, input_size, action_size = 8, 200, 40

    key = jax.random.PRNGKey(0)
    kx, kp = jax.random.split(key)
    x = jax.random.normal(kx, (batch, input_size), jnp.float32)
    params = init_params(kp, input_size, action_size)

    # One-time weight packing, then a jitted forward (slices fuse under jit).
    packed, asz = prepare_params(params)
    fwd = jax.jit(acnetwork_forward, static_argnums=(2,))
    logits, v = fwd(x, packed, asz)
    jax.block_until_ready((logits, v))

    logits_f32 = np.asarray(logits.astype(jnp.float32))
    v_f32 = np.asarray(v.astype(jnp.float32))

    # Tight check against a reference that mirrors the kernel's bf16 matmuls
    # (kernel additionally rounds the final result to bf16).
    ref_l_bf16, ref_v_bf16 = reference_forward_bf16(x, params)
    np.testing.assert_allclose(logits_f32, np.asarray(ref_l_bf16),
                               rtol=5e-3, atol=5e-3)
    np.testing.assert_allclose(v_f32, np.asarray(ref_v_bf16),
                               rtol=5e-3, atol=5e-3)

    # Loose sanity check against the full-f32 module semantics.
    ref_l_f32, ref_v_f32 = reference_forward_f32(x, params)
    np.testing.assert_allclose(logits_f32, np.asarray(ref_l_f32),
                               rtol=3e-2, atol=3e-2)
    np.testing.assert_allclose(v_f32, np.asarray(ref_v_f32),
                               rtol=3e-2, atol=3e-2)

    assert logits.shape == (batch, action_size) and v.shape == (batch, 1)
    print("KERNEL_OK")
</pallas_src>

<mosaic_0001>
module attributes {stable_mosaic.version = 11 : i64} {
  func.func @acnet_kernel(%arg0: i32, %arg1: memref<8x200xf32, #tpu.memory_space<vmem>>, %arg2: memref<200x256xbf16, #tpu.memory_space<vmem>>, %arg3: memref<1x256xf32, #tpu.memory_space<vmem>>, %arg4: memref<256x256xbf16, #tpu.memory_space<vmem>>, %arg5: memref<1x256xf32, #tpu.memory_space<vmem>>, %arg6: memref<256x128xbf16, #tpu.memory_space<vmem>>, %arg7: memref<1x128xf32, #tpu.memory_space<vmem>>, %arg8: memref<8x128xbf16, #tpu.memory_space<vmem>>) attributes {dimension_semantics = [#tpu.dimension_semantics<parallel>], iteration_bounds = array<i64: 1>, scalar_prefetch = 0 : i64, scratch_operands = 0 : i64, tpu.core_type = #tpu.core_type<tc>, window_params = [{transform_indices = @transform_0, window_bounds = array<i64: 8, 200>}, {pipeline_mode = #tpu.pipeline_mode<synchronous>, transform_indices = @transform_1, window_bounds = array<i64: 200, 256>}, {pipeline_mode = #tpu.pipeline_mode<synchronous>, transform_indices = @transform_2, window_bounds = array<i64: 1, 256>}, {pipeline_mode = #tpu.pipeline_mode<synchronous>, transform_indices = @transform_3, window_bounds = array<i64: 256, 256>}, {pipeline_mode = #tpu.pipeline_mode<synchronous>, transform_indices = @transform_4, window_bounds = array<i64: 1, 256>}, {pipeline_mode = #tpu.pipeline_mode<synchronous>, transform_indices = @transform_5, window_bounds = array<i64: 256, 128>}, {pipeline_mode = #tpu.pipeline_mode<synchronous>, transform_indices = @transform_6, window_bounds = array<i64: 1, 128>}, {transform_indices = @transform_7, window_bounds = array<i64: 8, 128>}]} {
    %c0 = arith.constant 0 : index
    %c0_0 = arith.constant 0 : index
    %0 = vector.load %arg1[%c0, %c0_0] : memref<8x200xf32, #tpu.memory_space<vmem>>, vector<8x200xf32>
    %1 = arith.truncf %0 : vector<8x200xf32> to vector<8x200xbf16>
    %c0_1 = arith.constant 0 : index
    %c0_2 = arith.constant 0 : index
    %2 = vector.load %arg2[%c0_1, %c0_2] : memref<200x256xbf16, #tpu.memory_space<vmem>>, vector<200x256xbf16>
    %cst = arith.constant dense<0.000000e+00> : vector<8x256xf32>
    %3 = tpu.matmul %1, %2, %cst {dimension_numbers = #tpu.dot_dimension_numbers<[1], [0], [0], [1], [0, 0, 1, 1], [], []>} : vector<8x200xbf16>, vector<200x256xbf16>, vector<8x256xf32> -> vector<8x256xf32>
    %c0_3 = arith.constant 0 : index
    %c0_4 = arith.constant 0 : index
    %4 = vector.load %arg3[%c0_3, %c0_4] : memref<1x256xf32, #tpu.memory_space<vmem>>, vector<1x256xf32>
    %5 = vector.broadcast %4 : vector<1x256xf32> to vector<8x256xf32>
    %6 = arith.addf %3, %5 : vector<8x256xf32>
    %cst_5 = arith.constant 0.000000e+00 : f32
    %7 = vector.broadcast %cst_5 : f32 to vector<8x256xf32>
    %8 = arith.maximumf %6, %7 : vector<8x256xf32>
    %9 = arith.truncf %8 : vector<8x256xf32> to vector<8x256xbf16>
    %c0_6 = arith.constant 0 : index
    %c0_7 = arith.constant 0 : index
    %10 = vector.load %arg4[%c0_6, %c0_7] : memref<256x256xbf16, #tpu.memory_space<vmem>>, vector<256x256xbf16>
    %cst_8 = arith.constant dense<0.000000e+00> : vector<8x256xf32>
    %11 = tpu.matmul %9, %10, %cst_8 {dimension_numbers = #tpu.dot_dimension_numbers<[1], [0], [0], [1], [0, 0, 1, 1], [], []>} : vector<8x256xbf16>, vector<256x256xbf16>, vector<8x256xf32> -> vector<8x256xf32>
    %c0_9 = arith.constant 0 : index
    %c0_10 = arith.constant 0 : index
    %12 = vector.load %arg5[%c0_9, %c0_10] : memref<1x256xf32, #tpu.memory_space<vmem>>, vector<1x256xf32>
    %13 = vector.broadcast %12 : vector<1x256xf32> to vector<8x256xf32>
    %14 = arith.addf %11, %13 : vector<8x256xf32>
    %cst_11 = arith.constant 0.000000e+00 : f32
    %15 = vector.broadcast %cst_11 : f32 to vector<8x256xf32>
    %16 = arith.maximumf %14, %15 : vector<8x256xf32>
    %17 = arith.truncf %16 : vector<8x256xf32> to vector<8x256xbf16>
    %c0_12 = arith.constant 0 : index
    %c0_13 = arith.constant 0 : index
    %18 = vector.load %arg6[%c0_12, %c0_13] : memref<256x128xbf16, #tpu.memory_space<vmem>>, vector<256x128xbf16>
    %cst_14 = arith.constant dense<0.000000e+00> : vector<8x128xf32>
    %19 = tpu.matmul %17, %18, %cst_14 {dimension_numbers = #tpu.dot_dimension_numbers<[1], [0], [0], [1], [0, 0, 1, 1], [], []>} : vector<8x256xbf16>, vector<256x128xbf16>, vector<8x128xf32> -> vector<8x128xf32>
    %c0_15 = arith.constant 0 : index
    %c0_16 = arith.constant 0 : index
    %20 = vector.load %arg7[%c0_15, %c0_16] : memref<1x128xf32, #tpu.memory_space<vmem>>, vector<1x128xf32>
    %21 = vector.broadcast %20 : vector<1x128xf32> to vector<8x128xf32>
    %22 = arith.addf %19, %21 : vector<8x128xf32>
    %23 = arith.truncf %22 : vector<8x128xf32> to vector<8x128xbf16>
    %c0_17 = arith.constant 0 : index
    %c0_18 = arith.constant 0 : index
    %24 = vector.load %arg8[%c0_17, %c0_18] : memref<8x128xbf16, #tpu.memory_space<vmem>>, vector<8x128xbf16>
    tpu.vector_store %arg8[%c0_17, %c0_18], %23 {strides = array<i32>} : memref<8x128xbf16, #tpu.memory_space<vmem>>, vector<8x128xbf16>,
    return
  }
  func.func @transform_0(%arg0: i32) -> (i32, i32) {
    %c0_i32 = arith.constant 0 : i32
    %c0_i32_0 = arith.constant 0 : i32
    return %arg0, %c0_i32 : i32, i32
  }
  func.func @transform_1(%arg0: i32) -> (i32, i32) {
    %c0_i32 = arith.constant 0 : i32
    %c0_i32_0 = arith.constant 0 : i32
    %c0_i32_1 = arith.constant 0 : i32
    return %c0_i32, %c0_i32_0 : i32, i32
  }
  func.func @transform_2(%arg0: i32) -> (i32, i32) {
    %c0_i32 = arith.constant 0 : i32
    %c0_i32_0 = arith.constant 0 : i32
    %c0_i32_1 = arith.constant 0 : i32
    return %c0_i32, %c0_i32_0 : i32, i32
  }
  func.func @transform_3(%arg0: i32) -> (i32, i32) {
    %c0_i32 = arith.constant 0 : i32
    %c0_i32_0 = arith.constant 0 : i32
    %c0_i32_1 = arith.constant 0 : i32
    return %c0_i32, %c0_i32_0 : i32, i32
  }
  func.func @transform_4(%arg0: i32) -> (i32, i32) {
    %c0_i32 = arith.constant 0 : i32
    %c0_i32_0 = arith.constant 0 : i32
    %c0_i32_1 = arith.constant 0 : i32
    return %c0_i32, %c0_i32_0 : i32, i32
  }
  func.func @transform_5(%arg0: i32) -> (i32, i32) {
    %c0_i32 = arith.constant 0 : i32
    %c0_i32_0 = arith.constant 0 : i32
    %c0_i32_1 = arith.constant 0 : i32
    return %c0_i32, %c0_i32_0 : i32, i32
  }
  func.func @transform_6(%arg0: i32) -> (i32, i32) {
    %c0_i32 = arith.constant 0 : i32
    %c0_i32_0 = arith.constant 0 : i32
    %c0_i32_1 = arith.constant 0 : i32
    return %c0_i32, %c0_i32_0 : i32, i32
  }
  func.func @transform_7(%arg0: i32) -> (i32, i32) {
    %c0_i32 = arith.constant 0 : i32
    %c0_i32_0 = arith.constant 0 : i32
    return %arg0, %c0_i32 : i32, i32
  }
}

</mosaic_0001>

<bundles_post_ra>
// kernel: acnetwork_forward.1
= control target key start
LH: loop header
LB: loop body
LE: loop exit
PB: predicated region body
PF: predicated region fallthrough
CT: control target
= control target key end

     0   :  { %12 = vsyncpa [#allocation3], 0  ;;  %s1102_s0 = inlined_call_operand.hbm [shape: f32[8,200], index: 0, kind: input, shape index: {}]   ;;  %s1103_s1 = inlined_call_operand.hbm [shape: bf16[200,256], index: 1, kind: input, shape index: {}]   ;;  %s1104_s2 = inlined_call_operand.vmem [shape: f32[1,256], index: 2, kind: input, shape index: {}]   ;;  %s1105_s3 = inlined_call_operand.hbm [shape: bf16[256,256], index: 3, kind: input, shape index: {}]   ;;  %s1106_s4 = inlined_call_operand.vmem [shape: f32[1,256], index: 4, kind: input, shape index: {}]   ;;  %s1107_s5 = inlined_call_operand.hbm [shape: bf16[256,128], index: 5, kind: input, shape index: {}]   ;;  %s1108_s6 = inlined_call_operand.vmem [shape: f32[1,128], index: 6, kind: input, shape index: {}]   ;;  %s1109_s7 = inlined_call_operand.vmem [shape: bf16[8,128], index: 7, kind: output, shape index: {}]  }
   0x1   :  { %13 = vsyncpa [#allocation5], 0 }
   0x2   :  { %14 = vsyncpa [#allocation8], 0  ;;  %s1030_s24 = smov [#allocation4]  }
   0x3   :  { %s30_s25 = sshll.u32 %s1030_s24, 4  ;;  %s31_s25 = int_to_ptr.vmem [resolvable:$true] %s30_s25 }
   0x4   :  { %s952_s26 = scalar_lea.vmem %s31_s25, 3200  ;;  %p957_p1 = scmp.lt.s32.totalorder %s31_s25, %s31_s25 }
   0x5   :  { %p953_p0 = scmp.ne.s32.totalorder %s31_s25, %s952_s26  ;;  %p958_p2 = scmp.lt.s32.totalorder %s952_s26, %s952_s26 }
   0x7   :  { %p959_p3 = por %p958_p2, %p957_p1 }
   0x9   :  { %p960_p4 = pnand %p959_p3, %p953_p0 }
   0xb   :  { %963 = shalt.err (!%p960_p4)
}
   0xc   :  { %s1031_s27 = smov 128   ;;  %s1032_s28 = smov 8  }
   0xd   :  { %36 = dma.hbm_to_vmem [thread:$0]  %s1103_s1, 3200, %s31_s25, [#allocation5], %s1031_s27, %s1031_s27, %s1032_s28  }
   0xe   :  { %s1033_s8 = smov [#allocation2]   ;;  %s1034_s10 = smov [#allocation6]  }
   0xf   :  { %s21_s9 = sshll.u32 %s1033_s8, 4  ;;  %s44_s11 = sshll.u32 %s1034_s10, 4  ;;  %s22_s9 = int_to_ptr.vmem [resolvable:$true] %s21_s9  ;;  %s45_s11 = int_to_ptr.vmem [resolvable:$true] %s44_s11 }
  0x10   :  { %s972_s12 = scalar_lea.vmem %s22_s9, 256  ;;  %p977_p6 = scmp.lt.s32.totalorder %s22_s9, %s22_s9 }
  0x11   :  { %p973_p5 = scmp.ne.s32.totalorder %s22_s9, %s972_s12  ;;  %p978_p7 = scmp.lt.s32.totalorder %s972_s12, %s972_s12 }
  0x13   :  { %p979_p8 = por %p978_p7, %p977_p6 }
  0x15   :  { %p980_p9 = pnand %p979_p8, %p973_p5 }
  0x17   :  { %983 = shalt.err (!%p980_p9)
}
  0x18   :  { %24 = dma.hbm_to_vmem [thread:$0]  %s1102_s0, 256, %s22_s9, [#allocation3]  }
  0x19   :  { %s992_s15 = scalar_lea.vmem %s45_s11, 4096  ;;  %p997_p11 = scmp.lt.s32.totalorder %s45_s11, %s45_s11 }
  0x1a   :  { %p993_p10 = scmp.ne.s32.totalorder %s45_s11, %s992_s15  ;;  %p998_p12 = scmp.lt.s32.totalorder %s992_s15, %s992_s15 }
  0x1c   :  { %p999_p13 = por %p998_p12, %p997_p11 }
  0x1e   :  { %p1000_p0 = pnand %p999_p13, %p993_p10 }
  0x20   :  { %1003 = shalt.err (!%p1000_p0)
}
  0x21   :  { %50 = dma.hbm_to_vmem [thread:$0]  %s1105_s3, 4096, %s45_s11, [#allocation5], %s1031_s27, %s1031_s27, %s1032_s28  }
  0x22   :  { %s1035_s17 = smov [#allocation7]  }
  0x23   :  { %s58_s18 = sshll.u32 %s1035_s17, 4  ;;  %s59_s18 = int_to_ptr.vmem [resolvable:$true] %s58_s18 }
  0x24   :  { %s1012_s19 = scalar_lea.vmem %s59_s18, 2048  ;;  %p1017_p2 = scmp.lt.s32.totalorder %s59_s18, %s59_s18 }
  0x25   :  { %p1013_p1 = scmp.ne.s32.totalorder %s59_s18, %s1012_s19  ;;  %p1018_p3 = scmp.lt.s32.totalorder %s1012_s19, %s1012_s19 }
  0x27   :  { %p1019_p4 = por %p1018_p3, %p1017_p2 }
  0x29   :  { %p1020_p5 = pnand %p1019_p4, %p1013_p1 }
  0x2b   :  { %1023 = shalt.err (!%p1020_p5)
}
  0x2c   :  { %s1036_s0 = smov 64   ;;  %s1037_s20 = smov 4  }
  0x2d   :  { %64 = dma.hbm_to_vmem [thread:$0]  %s1107_s5, 2048, %s59_s18, [#allocation8], %s1036_s0, %s1036_s0, %s1037_s20  }
  0x2e   :  { %1024 = dma.done.wait [#allocation3], 256  }
  0x2f   :  { %1025 = vsyncadd [#allocation3], 4294967040 }
  0x30   :  { %1026 = dma.done.wait [#allocation5], 7296  }
  0x31   :  { %1027 = vsyncadd [#allocation5], 4294960000 }
  0x32   :  { %1028 = dma.done.wait [#allocation8], 2048  }
  0x33   :  { %1029 = vsyncadd [#allocation8], 4294965248  ;;  %v842_v0 = vld [vmem:[#allocation4 + $0x74] ss:$8 sps:$4 sm:$0xff]   ;;  %v844_v1 = vld [vmem:[#allocation4 + $0x70] ss:$8 sps:$4 sm:$0xff]  }
  0x34   :  { %257 = vmatprep.subr.bf16.mxu0 %v842_v0  ;;  %v845_v2 = vld [vmem:[#allocation4 + $0x64] ss:$8 sps:$4 sm:$0xff]   ;;  %v847_v3 = vld [vmem:[#allocation4 + $0x60] ss:$8 sps:$4 sm:$0xff]   ;;  %v848_v4 = vld [vmem:[#allocation4 + $0x54] ss:$8 sps:$4 sm:$0xff]  }
  0x35   :  { %258 = vmatpush1.bf16.msra.mxu0 %v844_v1  ;;  %v850_v5 = vld [vmem:[#allocation4 + $0x50] ss:$8 sps:$4 sm:$0xff]   ;;  %v851_v6 = vld [vmem:[#allocation4 + $0x44] ss:$8 sps:$4 sm:$0xff]   ;;  %v853_v7 = vld [vmem:[#allocation4 + $0x40] ss:$8 sps:$4 sm:$0xff]  }
  0x36   :  { %259 = vmatprep.subr.bf16.mxu0 %v845_v2  ;;  %v854_v8 = vld [vmem:[#allocation4 + $0x34] ss:$8 sps:$4 sm:$0xff]   ;;  %v856_v9 = vld [vmem:[#allocation4 + $0x30] ss:$8 sps:$4 sm:$0xff]   ;;  %v857_v10 = vld [vmem:[#allocation4 + $0x24] ss:$8 sps:$4 sm:$0xff]  }
  0x37   :  { %v81_v11 = vld [vmem:[#allocation2 + $0x8] sm:$0xff]  ;;  %vm246_vm0 = vcmask 588800   ;;  %v859_v15 = vld [vmem:[#allocation4 + $0x20] ss:$8 sps:$4 sm:$0xff]   ;;  %v883_v16 = vld [vmem:[#allocation6 + $0x64] ss:$8 sps:$4 sm:$0xff]  }
  0x38   :  { %v83_v12 = vpack.c.bf16 %v81_v11, %v81_v11  ;;  %v880_v13 = vld [vmem:[#allocation6 + $0x74] ss:$8 sps:$4 sm:$0xff]   ;;  %v882_v14 = vld [vmem:[#allocation6 + $0x70] ss:$8 sps:$4 sm:$0xff]   ;;  %v885_v18 = vld [vmem:[#allocation6 + $0x60] ss:$8 sps:$4 sm:$0xff]  }
  0x39   :  { %260 = vmatpush1.bf16.msra.mxu0 %v847_v3  ;;  %v860_v17 = vld [vmem:[#allocation4 + $0x14] ss:$8 sps:$4 sm:$0xff]   ;;  %506 = vmatprep.subr.bf16.mxu1 %v880_v13  ;;  %v862_v20 = vld [vmem:[#allocation4 + $0x10] ss:$8 sps:$4 sm:$0xff]   ;;  %v863_v21 = vld [vmem:[#allocation4 + $0x4] ss:$8 sps:$4 sm:$0xff]  }
  0x3a   :  { %261 = vmatprep.subr.bf16.mxu0 %v848_v4  ;;  %762 = vmatprep.mubr.msk.bf16.mxu0 %vm246_vm0, %v83_v12  ;;  %v886_v19 = vld [vmem:[#allocation6 + $0x54] ss:$8 sps:$4 sm:$0xff]   ;;  %v888_v23 = vld [vmem:[#allocation6 + $0x50] ss:$8 sps:$4 sm:$0xff]   ;;  %v889_v24 = vld [vmem:[#allocation6 + $0x44] ss:$8 sps:$4 sm:$0xff]   ;;  %v111_v12 = vlaneseq }
  0x3b   :  { %507 = vmatpush1.bf16.msra.mxu1 %v882_v14  ;;  %v108_v22 = vld [vmem:[#allocation4 + $0xc0] sm:$0xff]  ;;  %vm250_vm1 = vcmask 1043456   ;;  %v891_v28 = vld [vmem:[#allocation6 + $0x40] ss:$8 sps:$4 sm:$0xff]   ;;  %v868_v31 = vld [vmem:[#allocation4 + $0xb4] ss:$8 sps:$4 sm:$0xff]  }
  0x3c   :  { %508 = vmatprep.subr.bf16.mxu1 %v883_v16  ;;  %v865_v25 = vld [vmem:[#allocation4] ss:$8 sps:$4 sm:$0xff]   ;;  %v760_v26 = vcombine.high %v108_v22, %v108_v22  ;;  %v759_v27 = vcombine.low %v108_v22, %v108_v22  ;;  %v892_v29 = vld [vmem:[#allocation6 + $0x34] ss:$8 sps:$4 sm:$0xff]   ;;  %v895_v33 = vld [vmem:[#allocation6 + $0x24] ss:$8 sps:$4 sm:$0xff]  }
  0x3d   :  { %262 = vmatpush1.bf16.msra.mxu0 %v850_v5  ;;  %v894_v32 = vld [vmem:[#allocation6 + $0x30] ss:$8 sps:$4 sm:$0xff]   ;;  %v871_v35 = vld [vmem:[#allocation4 + $0xa4] ss:$8 sps:$4 sm:$0xff]   ;;  %v897_v36 = vld [vmem:[#allocation6 + $0x20] ss:$8 sps:$4 sm:$0xff]  }
  0x3e   :  { %263 = vmatprep.subr.bf16.mxu0 %v851_v6  ;;  %v252_v30 = vsel %vm250_vm1, %v759_v27, 0  ;;  %v870_v34 = vld [vmem:[#allocation4 + $0xb0] ss:$8 sps:$4 sm:$0xff]   ;;  %v898_v37 = vld [vmem:[#allocation6 + $0x14] ss:$8 sps:$4 sm:$0xff]   ;;  %v934_v6 = vld [vmem:[#allocation7 + $0x60] sm:$0xff]  }
  0x3f   :  { %509 = vmatpush1.bf16.msra.mxu1 %v885_v18  ;;  %v873_v38 = vld [vmem:[#allocation4 + $0xa0] ss:$8 sps:$4 sm:$0xff]   ;;  %v874_v39 = vld [vmem:[#allocation4 + $0x94] ss:$8 sps:$4 sm:$0xff]   ;;  %v876_v42 = vld [vmem:[#allocation4 + $0x90] ss:$8 sps:$4 sm:$0xff]  }
  0x40   :  { %510 = vmatprep.subr.bf16.mxu1 %v886_v19  ;;  %v900_v40 = vld [vmem:[#allocation6 + $0x10] ss:$8 sps:$4 sm:$0xff]   ;;  %v901_v41 = vld [vmem:[#allocation6 + $0x4] ss:$8 sps:$4 sm:$0xff]   ;;  %v903_v44 = vld [vmem:[#allocation6] ss:$8 sps:$4 sm:$0xff]  }
  0x41   :  { %264 = vmatpush1.bf16.msra.mxu0 %v853_v7  ;;  %v877_v43 = vld [vmem:[#allocation4 + $0x84] ss:$8 sps:$4 sm:$0xff]   ;;  %v879_v46 = vld [vmem:[#allocation4 + $0x80] ss:$8 sps:$4 sm:$0xff]   ;;  %v80_v47 = vld [vmem:[#allocation2] sm:$0xff]  ;;  %v112_v13 = vshrl.u32 %v111_v12, 7 }
  0x42   :  { %265 = vmatprep.subr.bf16.mxu0 %v854_v8  ;;  %v904_v45 = vld [vmem:[#allocation6 + $0xf4] ss:$8 sps:$4 sm:$0xff]   ;;  %v906_v48 = vld [vmem:[#allocation6 + $0xf0] ss:$8 sps:$4 sm:$0xff]   ;;  %v82_v49 = vpack.c.bf16 %v80_v47, %v80_v47  ;;  %v907_v50 = vld [vmem:[#allocation6 + $0xe4] ss:$8 sps:$4 sm:$0xff]  }
  0x43   :  { %511 = vmatpush1.bf16.msra.mxu1 %v888_v23  ;;  %v909_v51 = vld [vmem:[#allocation6 + $0xe0] ss:$8 sps:$4 sm:$0xff]   ;;  %v910_v52 = vld [vmem:[#allocation6 + $0xd4] ss:$8 sps:$4 sm:$0xff]   ;;  %v912_v53 = vld [vmem:[#allocation6 + $0xd0] ss:$8 sps:$4 sm:$0xff]  }
  0x44   :  { %512 = vmatprep.subr.bf16.mxu1 %v889_v24  ;;  %v913_v54 = vld [vmem:[#allocation6 + $0xc4] ss:$8 sps:$4 sm:$0xff]   ;;  %v915_v55 = vld [vmem:[#allocation6 + $0xc0] ss:$8 sps:$4 sm:$0xff]   ;;  %v916_v56 = vld [vmem:[#allocation6 + $0xb4] ss:$8 sps:$4 sm:$0xff]  }
  0x45   :  { %266 = vmatpush1.bf16.msra.mxu0 %v856_v9  ;;  %v918_v57 = vld [vmem:[#allocation6 + $0xb0] ss:$8 sps:$4 sm:$0xff]   ;;  %v919_v58 = vld [vmem:[#allocation6 + $0xa4] ss:$8 sps:$4 sm:$0xff]   ;;  %v921_v59 = vld [vmem:[#allocation6 + $0xa0] ss:$8 sps:$4 sm:$0xff]  }
  0x46   :  { %267 = vmatprep.subr.bf16.mxu0 %v857_v10  ;;  %v922_v60 = vld [vmem:[#allocation6 + $0x94] ss:$8 sps:$4 sm:$0xff]   ;;  %v924_v61 = vld [vmem:[#allocation6 + $0x90] ss:$8 sps:$4 sm:$0xff]   ;;  %v925_v62 = vld [vmem:[#allocation6 + $0x84] ss:$8 sps:$4 sm:$0xff]  }
  0x47   :  { %513 = vmatpush1.bf16.msra.mxu1 %v891_v28  ;;  %v927_v63 = vld [vmem:[#allocation6 + $0x80] ss:$8 sps:$4 sm:$0xff]   ;;  %v928_v0 = vld [vmem:[#allocation7 + $0x78] sm:$0xff]   ;;  %v930_v2 = vld [vmem:[#allocation7 + $0x70] sm:$0xff]   ;;  %v113_v14 = vsub.s32 0, %v112_v13  ;;  %v117_v16 = vsub.s32 1, %v112_v13 }
  0x48   :  { %514 = vmatprep.subr.bf16.mxu1 %v892_v29  ;;  %v929_v1 = vld [vmem:[#allocation7 + $0x38] sm:$0xff]   ;;  %v931_v3 = vld [vmem:[#allocation7 + $0x30] sm:$0xff]   ;;  %v932_v4 = vld [vmem:[#allocation7 + $0x68] sm:$0xff]  }
  0x49   :  { %268 = vmatpush1.bf16.msra.mxu0 %v859_v15  ;;  %v933_v5 = vld [vmem:[#allocation7 + $0x28] sm:$0xff]   ;;  %v935_v7 = vld [vmem:[#allocation7 + $0x20] sm:$0xff]   ;;  %v936_v8 = vld [vmem:[#allocation7 + $0x58] sm:$0xff]  }
  0x4a   :  { %269 = vmatprep.subr.bf16.mxu0 %v860_v17  ;;  %v937_v9 = vld [vmem:[#allocation7 + $0x18] sm:$0xff]   ;;  %v938_v10 = vld [vmem:[#allocation7 + $0x50] sm:$0xff]   ;;  %v109_v15 = vld [vmem:[%s1104_s2] sm:$0x3] }
  0x4b   :  { %515 = vmatpush1.bf16.msra.mxu1 %v894_v32  ;;  %v939_v11 = vld [vmem:[#allocation7 + $0x10] sm:$0xff]   ;;  %v114_v17 = vrot.slane %v109_v15, %v113_v14  ;;  %v118_v18 = vrot.slane %v109_v15, %v117_v16  ;;  %v940_v29 = vld [vmem:[#allocation7 + $0x48] sm:$0xff]   ;;  %v943_v32 = vld [vmem:[#allocation7] sm:$0xff]  }
  0x4c   :  { %516 = vmatprep.subr.bf16.mxu1 %v895_v33  ;;  %v334_v33 = vld [vmem:[%s1106_s4] sm:$0x3] }
  0x4d   :  { %270 = vmatpush1.bf16.msra.mxu0 %v862_v20  ;;  %v795_v47 = vld [vmem:[%s1108_s6] ss:$0 sm:$0xff] }
  0x4e   :  { %271 = vmatprep.subr.bf16.mxu0 %v863_v21 }
  0x4f   :  { %517 = vmatpush1.bf16.msra.mxu1 %v897_v36 }
  0x50   :  { %518 = vmatprep.subr.bf16.mxu1 %v898_v37 }
  0x51   :  { %272 = vmatpush1.bf16.msra.mxu0 %v865_v25 }
  0x52   :  { %761 = vmatprep.subr.msk.bf16.mxu0 %vm250_vm1, %v760_v26 }
  0x53   :  { %519 = vmatpush1.bf16.msra.mxu1 %v900_v40 }
  0x54   :  { %520 = vmatprep.subr.bf16.mxu1 %v901_v41 }
  0x55   :  { %280 = vmatpush2.bf16.msra.mxu0 %v252_v30  ;;  %v941_v30 = vld [vmem:[#allocation7 + $0x8] sm:$0xff]  }
  0x56   :  { %281 = vmatprep.subr.bf16.mxu0 %v868_v31  ;;  %v942_v31 = vld [vmem:[#allocation7 + $0x40] sm:$0xff]  }
  0x57   :  { %521 = vmatpush1.bf16.msra.mxu1 %v903_v44 }
  0x58   :  { %522 = vmatprep.subr.bf16.mxu1 %v904_v45 }
  0x59   :  { %282 = vmatpush2.bf16.msra.mxu0 %v870_v34  ;;  %v339_v34 = vrot.slane %v334_v33, %v113_v14 }
  0x5a   :  { %283 = vmatprep.subr.bf16.mxu0 %v871_v35  ;;  %v343_v35 = vrot.slane %v334_v33, %v117_v16 }
  0x5b   :  { %523 = vmatpush2.bf16.msra.mxu1 %v906_v48 }
  0x5c   :  { %524 = vmatprep.subr.bf16.mxu1 %v907_v50 }
  0x5d   :  { %284 = vmatpush2.bf16.msra.mxu0 %v873_v38 }
  0x5e   :  { %285 = vmatprep.subr.bf16.mxu0 %v874_v39 }
  0x5f   :  { %525 = vmatpush2.bf16.msra.mxu1 %v909_v51 }
  0x60   :  { %526 = vmatprep.subr.bf16.mxu1 %v910_v52 }
  0x61   :  { %286 = vmatpush2.bf16.msra.mxu0 %v876_v42 }
  0x62   :  { %287 = vmatprep.subr.bf16.mxu0 %v877_v43 }
  0x63   :  { %527 = vmatpush2.bf16.msra.mxu1 %v912_v53 }
  0x64   :  { %528 = vmatprep.subr.bf16.mxu1 %v913_v54 }
  0x65   :  { %288 = vmatpush2.bf16.msra.mxu0 %v879_v46 }
  0x66   :  { %812 = vmatprep.subr.bf16.mxu0 %v928_v0 }
  0x67   :  { %529 = vmatpush2.bf16.msra.mxu1 %v915_v55 }
  0x68   :  { %290 = vmatmul.mubr.bf16.vlgmr.msra.gmra.mxu0 %v82_v49  ;;  %530 = vmatprep.subr.bf16.mxu1 %v916_v56 }
  0x69   :  { %813 = vmatpush3.bf16.msra.mxu0 %v929_v1 }
  0x6a   :  { %814 = vmatprep.subr.bf16.mxu0 %v930_v2 }
  0x6b   :  { %531 = vmatpush2.bf16.msra.mxu1 %v918_v57 }
  0x6c   :  { %532 = vmatprep.subr.bf16.mxu1 %v919_v58 }
  0x6d   :  { %815 = vmatpush3.bf16.msra.mxu0 %v931_v3 }
  0x6e   :  { %816 = vmatprep.subr.bf16.mxu0 %v932_v4 }
  0x6f   :  { %533 = vmatpush2.bf16.msra.mxu1 %v921_v59 }
  0x70   :  { %534 = vmatprep.subr.bf16.mxu1 %v922_v60 }
  0x71   :  { %817 = vmatpush3.bf16.msra.mxu0 %v933_v5 }
  0x72   :  { %818 = vmatprep.subr.bf16.mxu0 %v934_v6 }
  0x73   :  { %535 = vmatpush2.bf16.msra.mxu1 %v924_v61 }
  0x74   :  { %536 = vmatprep.subr.bf16.mxu1 %v925_v62 }
  0x75   :  { %819 = vmatpush3.bf16.msra.mxu0 %v935_v7 }
  0x76   :  { %820 = vmatprep.subr.bf16.mxu0 %v936_v8 }
  0x77   :  { %537 = vmatpush2.bf16.msra.mxu1 %v927_v63 }
  0x79   :  { %821 = vmatpush3.bf16.msra.mxu0 %v937_v9 }
  0x7a   :  { %822 = vmatprep.subr.bf16.mxu0 %v938_v10 }
  0x7d   :  { %823 = vmatpush3.bf16.msra.mxu0 %v939_v11 }
  0x7e   :  { %824 = vmatprep.subr.bf16.mxu0 %v940_v29 }
  0x81   :  { %825 = vmatpush3.bf16.msra.mxu0 %v941_v30 }
  0x82   :  { %826 = vmatprep.subr.bf16.mxu0 %v942_v31 }
  0x85   :  { %827 = vmatpush3.bf16.msra.mxu0 %v943_v32 }
 0x128   :  { %v291_v19 = vpop.f32.mrf.mxu0 }
 0x129   :  { %v292_v20 = vadd.f32 %v291_v19, %v114_v17 }
 0x12a   :  { %v293_v21 = vpop.f32.mrf.mxu0 }
 0x12b   :  { %v294_v22 = vadd.f32 %v293_v21, %v118_v18  ;;  %v298_v23 = vmax.f32 %v292_v20, 0.0 }
 0x12c   :  { %v295_v24 = vpop.f32.mrf.mxu0 }
 0x12d   :  { %v299_v25 = vmax.f32 %v294_v22, 0.0  ;;  %v300_v28 = vpack.c.bf16 %v298_v23, %v298_v23 }
 0x12e   :  { %v296_v26 = vpop.f32.mrf.mxu0 }
 0x12f   :  { %v301_v27 = vpack.c.bf16 %v299_v25, %v299_v25 }
 0x131   :  { %538 = vmatprep.mubr.bf16.mxu1 %v301_v27 }
 0x132   :  { %539 = vmatmul.mubr.bf16.vlgmr.msra.gmra.mxu1 %v300_v28 }
 0x1f2   :  { %v540_v36 = vpop.f32.mrf.mxu1 }
 0x1f3   :  { %v541_v37 = vadd.f32 %v540_v36, %v339_v34 }
 0x1f4   :  { %v542_v38 = vpop.f32.mrf.mxu1 }
 0x1f5   :  { %v543_v39 = vadd.f32 %v542_v38, %v343_v35  ;;  %v547_v40 = vmax.f32 %v541_v37, 0.0 }
 0x1f6   :  { %v544_v41 = vpop.f32.mrf.mxu1 }
 0x1f7   :  { %v548_v42 = vmax.f32 %v543_v39, 0.0  ;;  %v549_v45 = vpack.c.bf16 %v547_v40, %v547_v40 }
 0x1f8   :  { %v545_v43 = vpop.f32.mrf.mxu1 }
 0x1f9   :  { %v550_v44 = vpack.c.bf16 %v548_v42, %v548_v42 }
 0x1fb   :  { %718 = vmatprep.mubr.bf16.mxu0 %v550_v44 }
 0x1fc   :  { %719 = vmatmul.mubr.bf16.vlgmr.msra.gmra.mxu0 %v549_v45 }
 0x2bc   :  { %v828_v46 = vpop.f32.mrf.mxu0 }
 0x2be   :  { %v829_v48 = vpop.f32.mrf.mxu0 }
 0x2bf   :  { %v830_v49 = vadd.f32 %v829_v48, %v828_v46 }
 0x2c0   :  { %v831_v50 = vpop.f32.mrf.mxu0 }
 0x2c1   :  { %v721_v51 = vadd.f32 %v830_v49, %v795_v47 }
 0x2c2   :  { %v832_v52 = vpop.f32.mrf.mxu0 }
 0x2c3   :  { %v726_v53 = vpack.c.bf16 %v721_v51, %v721_v51 }
 0x2c5   :  { %727 = vst [vmem:[%s1109_s7] sm:$0xf] %v726_v53 }
 0x2c6   :  { %732 = vsyncpa [#allocation3], 1 }
 0x2c7   :  { %733 = vsyncpa [#allocation5], 1 }
 0x2c8   :  { %734 = vsyncpa [#allocation8], 1 }

</bundles_post_ra>
